<compile_context>
chip_gen: v7x
topology: tpu7x:2x2x1
jax: 0.10.0
libtpu: 0.0.40
codegen_flags: <defaults>
</compile_context>

<pallas_src>
import functools

import jax
import jax.numpy as jnp
from jax.experimental import pallas as pl
from jax.experimental.pallas import tpu as pltpu


def _round_up(a, b):
    return (a + b - 1) // b * b


def _hw_config():
    """Generation-aware defaults: score dtype (bf16 on bf16-native VPUs) + VMEM budget."""
    try:
        kind = jax.devices()[0].device_kind.lower()
    except Exception:
        kind = ""
    is_v7 = "v7" in kind
    bf16_vpu = is_v7 or ("v6" in kind)            # v6e/v7x VPU is bf16-native; v5e is not
    if is_v7:                                     # 64 MiB VMEM per TensorCore
        budget, vmem_limit = 40 << 20, 48 << 20
    else:                                         # v4/v5e/v5p/v6e: 128 MiB physical VMEM
        budget, vmem_limit = 80 << 20, 100 << 20
    return (jnp.bfloat16 if bf16_vpu else jnp.float32), budget, vmem_limit


def _conv_tile_bytes(tile_i, n_pad, hc, sd_bytes):
    """Generous per-grid-step VMEM footprint estimate of the attention kernel."""
    big = tile_i * n_pad
    return (big * (16 + 2 * sd_bytes)             # int8 adj (dbuf) + f32/score temporaries
            + 4 * n_pad * hc * sd_bytes           # xl + xl^T resident, double buffered
            + tile_i * hc * (2 * sd_bytes + 8)    # xr tile + f32 out tile, double buffered
            + 64 * hc)


def _select_tile(n, hc, sd_bytes, budget, tile_i):
    # int8 adjacency tiles -> keep the sublane dim a multiple of 32.
    tile_i = max(32, _round_up(min(tile_i, 256), 32))
    tile_i = min(tile_i, _round_up(n, 32))
    while True:
        n_pad = _round_up(n, tile_i)
        if tile_i <= 32 or _conv_tile_bytes(tile_i, n_pad, hc, sd_bytes) <= budget:
            break
        tile_i = max(32, _round_up(tile_i // 2, 32))
    if n_pad // tile_i == 1 and tile_i > 32:      # >= 2 grid steps so v7x's 2 TCs both work
        tile_i = max(32, _round_up(tile_i // 2, 32))
        n_pad = _round_up(n, tile_i)
    return tile_i, n_pad


# --------------------------------------------------------------------------------------
# pass 1: fused linear projections  [xl | xr] = x @ [Wl | Wr] + [bl | br]
# --------------------------------------------------------------------------------------
def _project_kernel(x_ref, w_ref, b_ref, xl_ref, xr_ref, *, hc, mxu_dtype):
    x = x_ref[...].astype(mxu_dtype)
    y = jnp.dot(x, w_ref[...], preferred_element_type=jnp.float32) + b_ref[...]
    xl_ref[...] = y[:, :hc].astype(xl_ref.dtype)
    xr_ref[...] = y[:, hc:].astype(xr_ref.dtype)


# --------------------------------------------------------------------------------------
# pass 2: GATv2 attention + neighbourhood aggregation (tiled over target nodes)
# --------------------------------------------------------------------------------------
def _gatv2_conv_kernel(att_ref, xr_ref, xlt_ref, xl_ref, adj_ref, cbias_ref, o_ref, *,
                       heads, out_ch, negative_slope, mxu_dtype, score_dtype):
    f32 = jnp.float32
    adj = adj_ref[...].astype(f32)                          # [TI, N]  1 edge j->i / 0 none
    bias = (adj - 1.0) * 1e30                               # additive mask: 0 / -1e30 (f32)
    row_has_edge = (jnp.max(adj, axis=1, keepdims=True) > 0.5).astype(f32)     # [TI, 1]

    half_p = 0.5 * (1.0 + negative_slope)                   # leaky(z) = hp*z + hm*|z|
    half_m = 0.5 * (1.0 - negative_slope)

    xr = xr_ref[...]                                        # [TI, H*C] small target tile

    head_outs = []
    for h in range(heads):                                  # static -> unrolled
        e_abs = None                                        # sum_c (hm*att_c) * |xr_ic + xl_jc|
        a_i = None                                          # sum_c att_c * xr_ic    [TI, 1]
        b_j = None                                          # sum_c att_c * xl_jc    [1, N]
        for c in range(out_ch):                             # static -> unrolled hot loop
            col = h * out_ch + c
            w = att_ref[h, c]                               # SMEM scalar (f32)
            xr_c = xr[:, col:col + 1]                       # [TI, 1] score_dtype
            xlt_c = xlt_ref[col:col + 1, :]                 # [1, N]  score_dtype (ref slice)
            z = jnp.abs(xr_c + xlt_c)                       # [TI, N]: add + abs
            wz = (half_m * w).astype(score_dtype)
            e_abs = wz * z if e_abs is None else e_abs + wz * z        # mul + add
            # tiny rank-1 pieces (f32, O(TI)+O(N) work per channel)
            xr_f = xr_c.astype(f32)
            xlt_f = xlt_c.astype(f32)
            a_i = w * xr_f if a_i is None else a_i + w * xr_f
            b_j = w * xlt_f if b_j is None else b_j + w * xlt_f

        # scores in f32: rank-1 linear part + |.| part + additive edge mask
        e = e_abs.astype(f32) + (half_p * (a_i + b_j) + bias)

        # masked softmax over incoming neighbours j of each target i
        e = e - jnp.max(e, axis=1, keepdims=True)
        p = jnp.exp(e)                                      # masked entries underflow to 0
        denom = jnp.sum(p, axis=1, keepdims=True)
        alpha = p * (row_has_edge / denom)                  # rows with no edge -> 0 output

        agg = jnp.dot(alpha.astype(mxu_dtype),
                      xl_ref[:, h * out_ch:(h + 1) * out_ch].astype(mxu_dtype),
                      preferred_element_type=jnp.float32)   # [TI, C]
        head_outs.append(agg)

    # single lane-dense store of the full [TI, H*C] output tile
    o_ref[...] = jnp.concatenate(head_outs, axis=1) + cbias_ref[...]


# --------------------------------------------------------------------------------------
# pass 3: GraphNorm (tiled: masked stats accumulation, then tiled normalize)
# --------------------------------------------------------------------------------------
def _gn_stats_kernel(y_ref, s1_ref, s2_ref, *, n_valid, tile_i):
    @pl.when(pl.program_id(0) == 0)
    def _():
        s1_ref[...] = jnp.zeros_like(s1_ref)
        s2_ref[...] = jnp.zeros_like(s2_ref)
    row = (jax.lax.broadcasted_iota(jnp.int32, y_ref.shape, 0)
           + pl.program_id(0) * tile_i)
    ym = jnp.where(row < n_valid, y_ref[...], 0.0)          # mask out padded nodes
    s1_ref[...] += jnp.sum(ym, axis=0, keepdims=True)
    s2_ref[...] += jnp.sum(ym * ym, axis=0, keepdims=True)


def _gn_norm_kernel(y_ref, s1_ref, s2_ref, gamma_ref, beta_ref, ms_ref, o_ref, *, inv_n, eps):
    mean = s1_ref[...] * inv_n                              # [1, H*C]
    ey2 = s2_ref[...] * inv_n
    ms = ms_ref[...]
    # var = E[(y - ms*mean)^2] = E[y^2] - (2*ms - ms^2) * mean^2
    var = ey2 - (2.0 * ms - ms * ms) * mean * mean
    scale = gamma_ref[...] * jax.lax.rsqrt(var + eps)
    o_ref[...] = (y_ref[...] - ms * mean) * scale + beta_ref[...]


# --------------------------------------------------------------------------------------
# wrapper
# --------------------------------------------------------------------------------------
def dgcn_block_apply(x, edge_index, params, *, heads, out_ch, negative_slope=0.2,
                     add_self_loops=True, eps=1e-5, tile_i=128,
                     mxu_dtype=jnp.bfloat16, score_dtype=None):
    """Forward of dgcn_block: DGCNConv (GATv2-style) + GraphNorm.

    mxu_dtype: matmuls (projection + aggregation) run on the MXU in this dtype with f32
    accumulation (bf16 default on all generations).  score_dtype: dtype of the VALU-bound
    attention-score accumulation; auto-selects bf16 on v6e/v7x, f32 elsewhere.
    """
    N, in_ch = x.shape
    hc = heads * out_ch

    auto_score, budget, vmem_limit = _hw_config()
    if score_dtype is None:
        score_dtype = auto_score
    sd_bytes = 2 if score_dtype == jnp.bfloat16 else 4

    tile_i, n_pad = _select_tile(N, hc, sd_bytes, budget, tile_i)
    grid = (n_pad // tile_i,)

    # ---- padded node features -------------------------------------------------------
    x_p = jnp.zeros((n_pad, in_ch), jnp.float32).at[:N, :].set(x.astype(jnp.float32))

    # int8 adjacency (1 = edge j->i).  Padded rows/cols stay 0, so padded sources are
    # masked out in-kernel and padded targets only get the conv bias (dropped at the end).
    # TODO(synk): for a static graph, hoist this O(N^2) construction out of the call path.
    src = edge_index[0].astype(jnp.int32)
    dst = edge_index[1].astype(jnp.int32)
    adj = jnp.zeros((n_pad, n_pad), jnp.int8).at[dst, src].set(1)
    if add_self_loops:
        diag = jnp.arange(N, dtype=jnp.int32)
        adj = adj.at[diag, diag].set(1)

    # fused projection weights / biases
    w_cat = jnp.concatenate([params["wl"], params["wr"]], axis=1).astype(mxu_dtype)
    b_cat = jnp.concatenate([params["bl"].reshape(1, hc),
                             params["br"].reshape(1, hc)], axis=1).astype(jnp.float32)
    att = params["att"].astype(jnp.float32)                     # [H, C] -> SMEM scalars
    cbias = params["conv_bias"].reshape(1, hc).astype(jnp.float32)

    # ---- pass 1: fused projections ----------------------------------------------------
    xl, xr = pl.pallas_call(
        functools.partial(_project_kernel, hc=hc, mxu_dtype=mxu_dtype),
        out_shape=(jax.ShapeDtypeStruct((n_pad, hc), score_dtype),
                   jax.ShapeDtypeStruct((n_pad, hc), score_dtype)),
        grid=grid,
        in_specs=[pl.BlockSpec((tile_i, in_ch), lambda i: (i, 0)),
                  pl.BlockSpec((in_ch, 2 * hc), lambda i: (0, 0)),
                  pl.BlockSpec((1, 2 * hc), lambda i: (0, 0))],
        out_specs=(pl.BlockSpec((tile_i, hc), lambda i: (i, 0)),
                   pl.BlockSpec((tile_i, hc), lambda i: (i, 0))),
        compiler_params=pltpu.CompilerParams(dimension_semantics=("parallel",)),
    )(x_p, w_cat, b_cat)

    # layout plumbing only: source features with the node axis in lanes for the score loop
    xlt = xl.T                                                   # [H*C, N_pad]

    # advisory cost estimate for the O(N^2) attention pass
    flops = n_pad * n_pad * heads * (4 * out_ch + 12) + 2 * n_pad * n_pad * hc
    ce = pl.CostEstimate(
        flops=int(flops),
        transcendentals=int(heads * n_pad * n_pad),
        bytes_accessed=int(n_pad * n_pad + 3 * n_pad * hc * sd_bytes + n_pad * hc * 4))

    # ---- pass 2: attention + aggregation ----------------------------------------------
    conv = pl.pallas_call(
        functools.partial(_gatv2_conv_kernel, heads=heads, out_ch=out_ch,
                          negative_slope=negative_slope, mxu_dtype=mxu_dtype,
                          score_dtype=score_dtype),
        out_shape=jax.ShapeDtypeStruct((n_pad, hc), jnp.float32),
        grid=grid,
        in_specs=[pl.BlockSpec(memory_space=pltpu.MemorySpace.SMEM),   # att [H, C] scalars
                  pl.BlockSpec((tile_i, hc), lambda i: (i, 0)),        # xr tile (targets)
                  pl.BlockSpec((hc, n_pad), lambda i: (0, 0)),         # xl^T (sources in lanes)
                  pl.BlockSpec((n_pad, hc), lambda i: (0, 0)),         # xl (aggregation operand)
                  pl.BlockSpec((tile_i, n_pad), lambda i: (i, 0)),     # int8 adjacency tile
                  pl.BlockSpec((1, hc), lambda i: (0, 0))],            # conv bias
        out_specs=pl.BlockSpec((tile_i, hc), lambda i: (i, 0)),
        compiler_params=pltpu.CompilerParams(
            dimension_semantics=("parallel",),                         # megacore sharding
            vmem_limit_bytes=vmem_limit),
        cost_estimate=ce,
    )(att, xr, xlt, xl, adj, cbias)

    # ---- pass 3a: GraphNorm statistics (masked, accumulated over node tiles) -----------
    s1, s2 = pl.pallas_call(
        functools.partial(_gn_stats_kernel, n_valid=N, tile_i=tile_i),
        out_shape=(jax.ShapeDtypeStruct((1, hc), jnp.float32),
                   jax.ShapeDtypeStruct((1, hc), jnp.float32)),
        grid=grid,
        in_specs=[pl.BlockSpec((tile_i, hc), lambda i: (i, 0))],
        out_specs=(pl.BlockSpec((1, hc), lambda i: (0, 0)),
                   pl.BlockSpec((1, hc), lambda i: (0, 0))),
        compiler_params=pltpu.CompilerParams(dimension_semantics=("arbitrary",)),
    )(conv)

    # ---- pass 3b: GraphNorm normalize (tiled) -------------------------------------------
    out = pl.pallas_call(
        functools.partial(_gn_norm_kernel, inv_n=1.0 / N, eps=eps),
        out_shape=jax.ShapeDtypeStruct((n_pad, hc), jnp.float32),
        grid=grid,
        in_specs=[pl.BlockSpec((tile_i, hc), lambda i: (i, 0)),
                  pl.BlockSpec((1, hc), lambda i: (0, 0)),
                  pl.BlockSpec((1, hc), lambda i: (0, 0)),
                  pl.BlockSpec((1, hc), lambda i: (0, 0)),
                  pl.BlockSpec((1, hc), lambda i: (0, 0)),
                  pl.BlockSpec((1, hc), lambda i: (0, 0))],
        out_specs=pl.BlockSpec((tile_i, hc), lambda i: (i, 0)),
        compiler_params=pltpu.CompilerParams(dimension_semantics=("parallel",)),
    )(conv, s1, s2,
      params["gn_gamma"].reshape(1, hc).astype(jnp.float32),
      params["gn_beta"].reshape(1, hc).astype(jnp.float32),
      params["gn_mean_scale"].reshape(1, hc).astype(jnp.float32))

    return out[:N]


# --------------------------------------------------------------------------------------
# parameters + pure-JAX reference
# --------------------------------------------------------------------------------------
def make_params(key, in_ch, out_ch, heads):
    """Deterministic synthetic parameters matching the module's shapes."""
    hc = heads * out_ch
    ks = jax.random.split(key, 8)
    scale = 0.1
    return {
        # DGCNConv / GATv2 parameters
        "wl": scale * jax.random.normal(ks[0], (in_ch, hc), jnp.float32),
        "wr": scale * jax.random.normal(ks[1], (in_ch, hc), jnp.float32),
        "bl": scale * jax.random.normal(ks[2], (hc,), jnp.float32),
        "br": scale * jax.random.normal(ks[3], (hc,), jnp.float32),
        "att": scale * jax.random.normal(ks[4], (heads, out_ch), jnp.float32),
        "conv_bias": scale * jax.random.normal(ks[5], (hc,), jnp.float32),
        # GraphNorm parameters (weight=1, bias=0, mean_scale=1 at init, like PyG)
        "gn_gamma": jnp.ones((hc,), jnp.float32),
        "gn_beta": jnp.zeros((hc,), jnp.float32),
        "gn_mean_scale": jnp.ones((hc,), jnp.float32),
    }


def _reference(x, edge_index, params, *, heads, out_ch, negative_slope, add_self_loops, eps):
    """Plain-JAX reference for the same forward pass."""
    N = x.shape[0]
    xl = x @ params["wl"] + params["bl"]
    xr = x @ params["wr"] + params["br"]
    src, dst = edge_index[0], edge_index[1]
    adj = jnp.zeros((N, N), bool).at[dst, src].set(True)
    if add_self_loops:
        adj = adj | jnp.eye(N, dtype=bool)
    outs = []
    for h in range(heads):
        xlh = xl[:, h * out_ch:(h + 1) * out_ch]
        xrh = xr[:, h * out_ch:(h + 1) * out_ch]
        s = xrh[:, None, :] + xlh[None, :, :]
        s = jnp.where(s >= 0, s, negative_slope * s)
        e = jnp.einsum("ijc,c->ij", s, params["att"][h])
        e = jnp.where(adj, e, -jnp.inf)
        alpha = jax.nn.softmax(e, axis=1)
        alpha = jnp.where(adj.any(axis=1, keepdims=True), alpha, 0.0)
        outs.append(alpha @ xlh)
    y = jnp.concatenate(outs, axis=1) + params["conv_bias"]
    mean = y.mean(axis=0, keepdims=True)
    cen = y - params["gn_mean_scale"] * mean
    var = (cen * cen).mean(axis=0, keepdims=True)
    return params["gn_gamma"] * cen / jnp.sqrt(var + eps) + params["gn_beta"]


if __name__ == "__main__":
    # Small graph: 8 nodes, 4 input features, 2 attention heads, 8 output channels/head.
    N, IN_CH, OUT_CH, HEADS = 8, 4, 8, 2

    key = jax.random.PRNGKey(0)
    k_x, k_p = jax.random.split(key)

    x = jax.random.normal(k_x, (N, IN_CH), jnp.float32)

    # Deterministic bidirectional ring graph: i <-> (i+1) % N.
    src = jnp.arange(N, dtype=jnp.int32)
    dst = (src + 1) % N
    edge_index = jnp.stack(
        [jnp.concatenate([src, dst]), jnp.concatenate([dst, src])], axis=0)  # [2, 2N]

    params = make_params(k_p, IN_CH, OUT_CH, HEADS)

    out = dgcn_block_apply(x, edge_index, params, heads=HEADS, out_ch=OUT_CH,
                           negative_slope=0.2, add_self_loops=True)
    out = jax.block_until_ready(out)

    with jax.default_matmul_precision("highest"):
        ref = _reference(x, edge_index, params, heads=HEADS, out_ch=OUT_CH,
                         negative_slope=0.2, add_self_loops=True, eps=1e-5)

    assert out.shape == (N, HEADS * OUT_CH)
    assert jnp.all(jnp.isfinite(out))
    # bf16 MXU everywhere + bf16 VPU score math on v6e/v7x -> modest tolerance vs f32 ref.
    assert jnp.allclose(out, ref, atol=5e-2, rtol=5e-2), float(jnp.max(jnp.abs(out - ref)))
    print("KERNEL_OK")
</pallas_src>

<mosaic_0001>
module attributes {stable_mosaic.version = 11 : i64} {
  func.func @_project_kernel(%arg0: i32, %arg1: memref<32x4xf32, #tpu.memory_space<vmem>>, %arg2: memref<4x32xbf16, #tpu.memory_space<vmem>>, %arg3: memref<1x32xf32, #tpu.memory_space<vmem>>, %arg4: memref<32x16xf32, #tpu.memory_space<vmem>>, %arg5: memref<32x16xf32, #tpu.memory_space<vmem>>) attributes {dimension_semantics = [#tpu.dimension_semantics<parallel>], iteration_bounds = array<i64: 1>, scalar_prefetch = 0 : i64, scratch_operands = 0 : i64, tpu.core_type = #tpu.core_type<tc>, window_params = [{transform_indices = @transform_0, window_bounds = array<i64: 32, 4>}, {pipeline_mode = #tpu.pipeline_mode<synchronous>, transform_indices = @transform_1, window_bounds = array<i64: 4, 32>}, {pipeline_mode = #tpu.pipeline_mode<synchronous>, transform_indices = @transform_2, window_bounds = array<i64: 1, 32>}, {transform_indices = @transform_3, window_bounds = array<i64: 32, 16>}, {transform_indices = @transform_4, window_bounds = array<i64: 32, 16>}]} {
    %c0 = arith.constant 0 : index
    %c0_0 = arith.constant 0 : index
    %0 = vector.load %arg1[%c0, %c0_0] : memref<32x4xf32, #tpu.memory_space<vmem>>, vector<32x4xf32>
    %1 = arith.truncf %0 : vector<32x4xf32> to vector<32x4xbf16>
    %c0_1 = arith.constant 0 : index
    %c0_2 = arith.constant 0 : index
    %2 = vector.load %arg2[%c0_1, %c0_2] : memref<4x32xbf16, #tpu.memory_space<vmem>>, vector<4x32xbf16>
    %cst = arith.constant dense<0.000000e+00> : vector<32x32xf32>
    %3 = tpu.matmul %1, %2, %cst {dimension_numbers = #tpu.dot_dimension_numbers<[1], [0], [0], [1], [0, 0, 1, 1], [], []>} : vector<32x4xbf16>, vector<4x32xbf16>, vector<32x32xf32> -> vector<32x32xf32>
    %c0_3 = arith.constant 0 : index
    %c0_4 = arith.constant 0 : index
    %4 = vector.load %arg3[%c0_3, %c0_4] : memref<1x32xf32, #tpu.memory_space<vmem>>, vector<1x32xf32>
    %5 = vector.broadcast %4 : vector<1x32xf32> to vector<32x32xf32>
    %6 = arith.addf %3, %5 : vector<32x32xf32>
    %7 = vector.extract_strided_slice %6 {offsets = [0, 0], sizes = [32, 16], strides = [1, 1]} : vector<32x32xf32> to vector<32x16xf32>
    %c0_5 = arith.constant 0 : index
    %c0_6 = arith.constant 0 : index
    %8 = vector.load %arg4[%c0_5, %c0_6] : memref<32x16xf32, #tpu.memory_space<vmem>>, vector<32x16xf32>
    tpu.vector_store %arg4[%c0_5, %c0_6], %7 {strides = array<i32>} : memref<32x16xf32, #tpu.memory_space<vmem>>, vector<32x16xf32>,
    %9 = vector.extract_strided_slice %6 {offsets = [0, 16], sizes = [32, 16], strides = [1, 1]} : vector<32x32xf32> to vector<32x16xf32>
    %c0_7 = arith.constant 0 : index
    %c0_8 = arith.constant 0 : index
    %10 = vector.load %arg5[%c0_7, %c0_8] : memref<32x16xf32, #tpu.memory_space<vmem>>, vector<32x16xf32>
    tpu.vector_store %arg5[%c0_7, %c0_8], %9 {strides = array<i32>} : memref<32x16xf32, #tpu.memory_space<vmem>>, vector<32x16xf32>,
    return
  }
  func.func @transform_0(%arg0: i32) -> (i32, i32) {
    %c0_i32 = arith.constant 0 : i32
    %c0_i32_0 = arith.constant 0 : i32
    return %arg0, %c0_i32 : i32, i32
  }
  func.func @transform_1(%arg0: i32) -> (i32, i32) {
    %c0_i32 = arith.constant 0 : i32
    %c0_i32_0 = arith.constant 0 : i32
    %c0_i32_1 = arith.constant 0 : i32
    return %c0_i32, %c0_i32_0 : i32, i32
  }
  func.func @transform_2(%arg0: i32) -> (i32, i32) {
    %c0_i32 = arith.constant 0 : i32
    %c0_i32_0 = arith.constant 0 : i32
    %c0_i32_1 = arith.constant 0 : i32
    return %c0_i32, %c0_i32_0 : i32, i32
  }
  func.func @transform_3(%arg0: i32) -> (i32, i32) {
    %c0_i32 = arith.constant 0 : i32
    %c0_i32_0 = arith.constant 0 : i32
    return %arg0, %c0_i32 : i32, i32
  }
  func.func @transform_4(%arg0: i32) -> (i32, i32) {
    %c0_i32 = arith.constant 0 : i32
    %c0_i32_0 = arith.constant 0 : i32
    return %arg0, %c0_i32 : i32, i32
  }
}

</mosaic_0001>

<bundles_post_ra>
// kernel: tpu_custom_call.1
= control target key start
LH: loop header
LB: loop body
LE: loop exit
PB: predicated region body
PF: predicated region fallthrough
CT: control target
= control target key end

     0   :  { %vm38_vm0 = vcmask 1041408   ;;  %vm31_vm1 = vcmask 31744   ;;  %vm91_vm2 = vcmask 130048   ;;  %s214_s1 = inlined_call_operand.vmem [shape: bf16[4,32], index: 1, kind: input, shape index: {}]   ;;  %s215_s0 = inlined_call_operand.vmem [shape: f32[32,4], index: 0, kind: input, shape index: {}]   ;;  %s216_s2 = inlined_call_operand.vmem [shape: f32[1,32], index: 2, kind: input, shape index: {}]   ;;  %s217_s3 = inlined_call_operand.vmem [shape: f32[32,16], index: 3, kind: output, shape index: {0}]   ;;  %s218_s4 = inlined_call_operand.vmem [shape: f32[32,16], index: 4, kind: output, shape index: {1}]  }
   0x1   :  { %v23_v0 = vld [vmem:[%s214_s1] sm:$0x3]  ;;  %v18_v2 = vld [vmem:[%s215_s0 + $0x8] sm:$0xff]  ;;  %v19_v5 = vld [vmem:[%s215_s0 + $0x10] sm:$0xff] }
   0x2   :  { %v17_v1 = vld [vmem:[%s215_s0] sm:$0xff]  ;;  %136 = vmatprep.subr.msk.bf16.mxu0 %vm38_vm0, %v23_v0  ;;  %v40_v3 = vsel %vm38_vm0, %v23_v0, 0  ;;  %v20_v6 = vld [vmem:[%s215_s0 + $0x18] sm:$0xff]  ;;  %s138_s0 = smov 112  }
   0x3   :  { %v21_v4 = vpack.c.bf16 %v18_v2, %v17_v1  ;;  %131 = vmatpush3.bf16.msra.mxu0 %v40_v3  ;;  %v22_v7 = vpack.c.bf16 %v20_v6, %v19_v5  ;;  %v124_v8 = vld [vmem:[%s216_s2] ss:$0 sm:$0xff] }
   0x5   :  { %132 = vmatprep.mubr.msk.bf16.mxu0 %vm31_vm1, %v21_v4 }
   0x6   :  { %133 = vmatmul.mubr.msk.bf16.vlgmr.msra.gmra.mrb[0].mxu0 %vm31_vm1, %v22_v7 }
  0xd9   :  { %v134_v9 = vpop.f32.mrb[0].mxu0 }
  0xda   :  { %v85_v10 = vadd.f32 %v134_v9, %v124_v8  ;;  %v76_v11 = vpop.f32.mrb[1].mxu0 }
  0xdb   :  { %v77_v12 = vadd.f32 %v124_v8, %v76_v11  ;;  %v135_v13 = vpop.f32.mrb[2].mxu0 }
  0xdc   :  { %94 = vst.msk [vmem:[%s217_s3 + $0x10] sm:$0xff] %vm91_vm2, %v85_v10  ;;  %v88_v14 = vadd.f32 %v135_v13, %v124_v8  ;;  %104 = vrot.lane.b32.xlu1 %v85_v10, %s138_s0  ;;  %v79_v15 = vpop.f32.mrb[3].mxu0 }
  0xdd   :  { %92 = vst.msk [vmem:[%s217_s3] sm:$0xff] %vm91_vm2, %v77_v12  ;;  %v80_v16 = vadd.f32 %v124_v8, %v79_v15  ;;  %100 = vrot.lane.b32.xlu0 %v77_v12, %s138_s0 }
  0xde   :  { %95 = vst.msk [vmem:[%s217_s3 + $0x18] sm:$0xff] %vm91_vm2, %v88_v14 }
  0xdf   :  { %93 = vst.msk [vmem:[%s217_s3 + $0x8] sm:$0xff] %vm91_vm2, %v80_v16 }
  0xe0   :  { %106 = vrot.lane.b32.xlu1 %v88_v14, %s138_s0 }
  0xe1   :  { %102 = vrot.lane.b32.xlu0 %v80_v16, %s138_s0 }
 0x14e   :  { %v105_v17 = vpop.permute.xlu1 %104 }
 0x14f   :  { %114 = vst.msk [vmem:[%s218_s4 + $0x10] sm:$0xff] %vm91_vm2, %v105_v17  ;;  %v101_v18 = vpop.permute.xlu0 %100 }
 0x150   :  { %112 = vst.msk [vmem:[%s218_s4] sm:$0xff] %vm91_vm2, %v101_v18 }
 0x152   :  { %v107_v19 = vpop.permute.xlu1 %106 }
 0x153   :  { %115 = vst.msk [vmem:[%s218_s4 + $0x18] sm:$0xff] %vm91_vm2, %v107_v19  ;;  %v103_v20 = vpop.permute.xlu0 %102 }
 0x154   :  { %113 = vst.msk [vmem:[%s218_s4 + $0x8] sm:$0xff] %vm91_vm2, %v103_v20 }

</bundles_post_ra>
